<compile_context>
chip_gen: v7x
topology: tpu7x:2x2x1
jax: 0.10.0
libtpu: 0.0.40
codegen_flags: <defaults>
</compile_context>

<pallas_src>
import jax
import jax.numpy as jnp
from jax.experimental import pallas as pl
from jax.experimental.pallas import tpu as pltpu


def _round_up(n, m):
    return ((n + m - 1) // m) * m


def _mean_kernel(x_ref, w_ref, b_ref, mean_ref):
    # mean = x @ W + b; MXU matmul with f32 accumulation, bias add on the VPU.
    mean_ref[...] = (
        jnp.dot(x_ref[...], w_ref[...], preferred_element_type=jnp.float32)
        + b_ref[...]
    ).astype(mean_ref.dtype)


def _choose_tile_b(B, tile_b, bytes_per_row):
    """Pick the batch tile. Big tiles amortize the ~0.35 us/step overhead, but:
       * stay inside a conservative double-buffered VMEM budget (v5e scoped = 16 MiB),
       * give >=2 grid steps for mid-size batches (v7x megacore occupancy),
       * never exceed what the batch actually needs."""
    vmem_budget = 12 * 1024 * 1024                       # conservative across v5e/v6e/v7x
    max_rows = max(8, (vmem_budget // (2 * bytes_per_row)) // 8 * 8)
    tile_b = min(max(8, _round_up(tile_b, 8)), max_rows)
    if B <= min(512, tile_b):
        return B                                         # tiny batch: one full-extent tile
    half = _round_up(-(-B // 2), 8)                      # ceil(B/2), sublane-aligned
    return min(tile_b, max(512, min(half, tile_b)))      # >=2 steps when B <= 2*tile_b


def diag_gaussian_forward(x, weight, bias, logstd_bias, *, tile_b=8192):
    """x: (B, num_inputs); weight: (num_inputs, num_outputs) (transpose of the PyTorch
    Linear weight); bias, logstd_bias: (num_outputs,).
    Returns (loc, scale): loc is (B, num_outputs); scale is the state-independent
    (num_outputs,) vector exp(logstd) (it broadcasts against loc in FixedNormal)."""
    B, I = x.shape
    O = weight.shape[1]
    out_dtype = x.dtype

    # Parameters kept resident in VMEM across grid steps (constant index maps).
    w_k = weight.astype(x.dtype)                         # matmul operand matches activations
    b_k = bias.astype(jnp.float32).reshape(1, O)         # f32 epilogue add

    bytes_per_row = I * jnp.dtype(x.dtype).itemsize + O * jnp.dtype(out_dtype).itemsize
    TILE_B = _choose_tile_b(B, tile_b, bytes_per_row)
    grid = (pl.cdiv(B, TILE_B),)                         # ragged last block: OOB stores masked

    loc = pl.pallas_call(
        _mean_kernel,
        out_shape=jax.ShapeDtypeStruct((B, O), out_dtype),
        grid=grid,
        in_specs=[
            pl.BlockSpec((TILE_B, I), lambda i: (i, 0)),  # x: tiled over batch, native dtype
            pl.BlockSpec((I, O), lambda i: (0, 0)),       # W: resident across grid steps
            pl.BlockSpec((1, O), lambda i: (0, 0)),       # bias: resident across grid steps
        ],
        out_specs=pl.BlockSpec((TILE_B, O), lambda i: (i, 0)),
        compiler_params=pltpu.CompilerParams(
            dimension_semantics=("parallel",),            # megacore sharding on v7x
        ),
    )(x, w_k, b_k)

    # scale = exp(logstd) is state-independent; return the parameter vector (broadcasts).
    scale = jnp.exp(logstd_bias.astype(jnp.float32))
    return loc, scale


def _orthogonal_init(key, rows, cols, gain):
    """Deterministic orthogonal init matching nn.init.orthogonal_ semantics."""
    n = max(rows, cols)
    a = jax.random.normal(key, (n, n), dtype=jnp.float32)
    q, r = jnp.linalg.qr(a)
    q = q * jnp.sign(jnp.diag(r))[None, :]   # sign correction for uniqueness
    return gain * q[:rows, :cols]


if __name__ == "__main__":
    key = jax.random.PRNGKey(0)
    k_x, k_w, k_x2 = jax.random.split(key, 3)

    B, NUM_INPUTS, NUM_OUTPUTS = 8, 32, 4

    # Parameters (mirrors DiagGaussian.__init__):
    #   fc_mean.weight: orthogonal, gain=0.01 ; fc_mean.bias: 0 ; logstd bias: 0.
    # PyTorch Linear weight is (out, in); we store its transpose (in, out) for x @ W.
    w_out_in = _orthogonal_init(k_w, NUM_OUTPUTS, NUM_INPUTS, gain=0.01)  # (O, I)
    weight = jnp.transpose(w_out_in)                                      # (I, O)
    bias = jnp.zeros((NUM_OUTPUTS,), jnp.float32)
    logstd_bias = jnp.zeros((NUM_OUTPUTS,), jnp.float32)

    # --- small-batch check (single full-extent tile) --------------------------------
    x = jax.random.normal(k_x, (B, NUM_INPUTS), dtype=jnp.float32)
    loc, scale = diag_gaussian_forward(x, weight, bias, logstd_bias)
    jax.block_until_ready((loc, scale))

    ref_loc = x @ weight + bias[None, :]
    assert loc.shape == (B, NUM_OUTPUTS) and scale.shape == (NUM_OUTPUTS,)
    assert jnp.allclose(loc, ref_loc, atol=1e-5, rtol=1e-5)
    assert jnp.allclose(jnp.broadcast_to(scale, (B, NUM_OUTPUTS)),
                        jnp.ones((B, NUM_OUTPUTS)), atol=1e-6, rtol=1e-6)

    # --- ragged multi-step grid (B=300, TILE_B=128): masked OOB stores on last block -
    B2 = 300
    x2 = jax.random.normal(k_x2, (B2, NUM_INPUTS), dtype=jnp.float32)
    loc2, scale2 = diag_gaussian_forward(x2, weight, bias, logstd_bias, tile_b=128)
    jax.block_until_ready((loc2, scale2))

    ref_loc2 = x2 @ weight + bias[None, :]
    assert loc2.shape == (B2, NUM_OUTPUTS)
    assert jnp.allclose(loc2, ref_loc2, atol=1e-5, rtol=1e-5)
    assert jnp.allclose(scale2, jnp.ones((NUM_OUTPUTS,)), atol=1e-6, rtol=1e-6)

    # --- bf16 activations: x read in native dtype (no wrapper up-cast) --------------
    x3 = x2.astype(jnp.bfloat16)
    loc3, _ = diag_gaussian_forward(x3, weight, bias, logstd_bias)
    jax.block_until_ready(loc3)
    ref_loc3 = (x3.astype(jnp.float32)
                @ weight.astype(jnp.bfloat16).astype(jnp.float32) + bias[None, :])
    assert loc3.dtype == jnp.bfloat16 and loc3.shape == (B2, NUM_OUTPUTS)
    assert jnp.allclose(loc3.astype(jnp.float32), ref_loc3, atol=1e-2, rtol=3e-2)

    print("KERNEL_OK")
</pallas_src>

<mosaic_0001>
module attributes {stable_mosaic.version = 11 : i64} {
  func.func @_mean_kernel(%arg0: i32, %arg1: memref<8x32xf32, #tpu.memory_space<vmem>>, %arg2: memref<32x4xf32, #tpu.memory_space<vmem>>, %arg3: memref<1x4xf32, #tpu.memory_space<vmem>>, %arg4: memref<8x4xf32, #tpu.memory_space<vmem>>) attributes {dimension_semantics = [#tpu.dimension_semantics<parallel>], iteration_bounds = array<i64: 1>, scalar_prefetch = 0 : i64, scratch_operands = 0 : i64, tpu.core_type = #tpu.core_type<tc>, window_params = [{transform_indices = @transform_0, window_bounds = array<i64: 8, 32>}, {pipeline_mode = #tpu.pipeline_mode<synchronous>, transform_indices = @transform_1, window_bounds = array<i64: 32, 4>}, {pipeline_mode = #tpu.pipeline_mode<synchronous>, transform_indices = @transform_2, window_bounds = array<i64: 1, 4>}, {transform_indices = @transform_3, window_bounds = array<i64: 8, 4>}]} {
    %c0 = arith.constant 0 : index
    %c0_0 = arith.constant 0 : index
    %0 = vector.load %arg1[%c0, %c0_0] : memref<8x32xf32, #tpu.memory_space<vmem>>, vector<8x32xf32>
    %c0_1 = arith.constant 0 : index
    %c0_2 = arith.constant 0 : index
    %1 = vector.load %arg2[%c0_1, %c0_2] : memref<32x4xf32, #tpu.memory_space<vmem>>, vector<32x4xf32>
    %cst = arith.constant dense<0.000000e+00> : vector<8x4xf32>
    %2 = tpu.matmul %0, %1, %cst {dimension_numbers = #tpu.dot_dimension_numbers<[1], [0], [0], [1], [0, 0, 1, 1], [], []>} : vector<8x32xf32>, vector<32x4xf32>, vector<8x4xf32> -> vector<8x4xf32>
    %c0_3 = arith.constant 0 : index
    %c0_4 = arith.constant 0 : index
    %3 = vector.load %arg3[%c0_3, %c0_4] : memref<1x4xf32, #tpu.memory_space<vmem>>, vector<1x4xf32>
    %4 = vector.broadcast %3 : vector<1x4xf32> to vector<8x4xf32>
    %5 = arith.addf %2, %4 : vector<8x4xf32>
    %c0_5 = arith.constant 0 : index
    %c0_6 = arith.constant 0 : index
    %6 = vector.load %arg4[%c0_5, %c0_6] : memref<8x4xf32, #tpu.memory_space<vmem>>, vector<8x4xf32>
    tpu.vector_store %arg4[%c0_5, %c0_6], %5 {strides = array<i32>} : memref<8x4xf32, #tpu.memory_space<vmem>>, vector<8x4xf32>,
    return
  }
  func.func @transform_0(%arg0: i32) -> (i32, i32) {
    %c0_i32 = arith.constant 0 : i32
    %c0_i32_0 = arith.constant 0 : i32
    return %arg0, %c0_i32 : i32, i32
  }
  func.func @transform_1(%arg0: i32) -> (i32, i32) {
    %c0_i32 = arith.constant 0 : i32
    %c0_i32_0 = arith.constant 0 : i32
    %c0_i32_1 = arith.constant 0 : i32
    return %c0_i32, %c0_i32_0 : i32, i32
  }
  func.func @transform_2(%arg0: i32) -> (i32, i32) {
    %c0_i32 = arith.constant 0 : i32
    %c0_i32_0 = arith.constant 0 : i32
    %c0_i32_1 = arith.constant 0 : i32
    return %c0_i32, %c0_i32_0 : i32, i32
  }
  func.func @transform_3(%arg0: i32) -> (i32, i32) {
    %c0_i32 = arith.constant 0 : i32
    %c0_i32_0 = arith.constant 0 : i32
    return %arg0, %c0_i32 : i32, i32
  }
}

</mosaic_0001>

<bundles_post_ra>
// kernel: tpu_custom_call.1
= control target key start
LH: loop header
LB: loop body
LE: loop exit
PB: predicated region body
PF: predicated region fallthrough
CT: control target
= control target key end

     0   :  { %v133_v0 = vmov 0.0|0.0   ;;  %vm134_vm0 = vmmov 0   ;;  %v135_v4 = vmov 0.0   ;;  %vm26_vm1 = vcmask 261120   ;;  %s177_s1 = inlined_call_operand.vmem [shape: f32[32,4], index: 1, kind: input, shape index: {}]   ;;  %s178_s0 = inlined_call_operand.vmem [shape: f32[8,32], index: 0, kind: input, shape index: {}]   ;;  %s179_s2 = inlined_call_operand.vmem [shape: f32[1,4], index: 2, kind: input, shape index: {}]   ;;  %s180_s3 = inlined_call_operand.vmem [shape: f32[8,4], index: 3, kind: output, shape index: {}]  }
   0x1   :  { %124 = vmatprep.subr.bf16.mxu0 %v133_v0  ;;  %v15_v1 = vld [vmem:[%s177_s1] sm:$0xff]  ;;  %v16_v2 = vld [vmem:[%s177_s1 + $0x8] sm:$0xff]  ;;  %v17_v3 = vld [vmem:[%s177_s1 + $0x10] sm:$0xff]  ;;  %121 = vmatprep.mubr.msk.f32.mxu0 %vm134_vm0, %v135_v4  ;;  %vm100_vm2 = vcmask 31744  }
   0x2   :  { %v125_v5 = vpack.c.bf16 %v16_v2, %v15_v1  ;;  %v18_v6 = vld [vmem:[%s177_s1 + $0x18] sm:$0xff]  ;;  %v14_v8 = vld [vmem:[%s178_s0] sm:$0xff] }
   0x3   :  { %v128_v7 = vpack.c.bf16 %v18_v6, %v17_v3  ;;  %v106_v9 = vld [vmem:[%s179_s2] ss:$0 sm:$0xff] }
   0x4   :  { %126 = vmatpush3.bf16.msra.mxu0 %v125_v5 }
   0x5   :  { %127 = vmatprep.subr.bf16.mxu0 %v133_v0 }
   0x8   :  { %129 = vmatpush3.bf16.msra.mxu0 %v128_v7 }
   0xb   :  { %122 = vmatmul.mubr.msk.f32.vlgmr.msra.gmra.mrb[0].mxu0 %vm26_vm1, %v14_v8 }
  0xde   :  { %v96_v10 = vpop.f32.mrb[0].mxu0 }
  0xdf   :  { %v97_v11 = vadd.f32 %v106_v9, %v96_v10  ;;  %v123_v12 = vpop.f32.mrb[1].mxu0 }
  0xe1   :  { %101 = vst.msk [vmem:[%s180_s3] sm:$0xff] %vm100_vm2, %v97_v11 }

</bundles_post_ra>
